<compile_context>
chip_gen: v5e
topology: v5e:2x2
jax: 0.10.0
libtpu: 0.0.40
codegen_flags: <defaults>
</compile_context>

<pallas_src>
import numpy as np
import jax
import jax.numpy as jnp
from jax import lax
from jax.experimental import pallas as pl
from jax.experimental.pallas import tpu as pltpu

B = 16          # fixed by the reference module: n = torch.zeros(16, 8)
IN_DIM = 16
HID = 32
CH = 8          # 2 * number of complex channel uses
OUT_DIM = 16
ATT_HID = 8
L_TAPS = 3      # complex channel taps (h has 2*L_TAPS reals)

# offsets into the packed bias slab [b1; b2; b3; b4]  (all multiples of 8)
_B1_OFF = 0
_B2_OFF = HID                   # 32
_B3_OFF = HID + CH              # 40
_B4_OFF = 2 * HID + CH          # 72
_B_TOT = 2 * HID + CH + OUT_DIM  # 88


# ----------------------------------------------------------------------------
# Pallas kernel: P problems (P*B lane-dense columns) per grid step.
#   x_ref   (IN_DIM, M)   feature-major input block,  M = P*B (multiple of 128)
#   n_ref   (CH, M)       feature-major noise block
#   snr_ref (1, M)        per-column (= per-problem, broadcast) SNR estimate
#   hmat    (CH, CH)      column-layout Toeplitz channel matrix
#   w1..w4                original F.linear orientation (out_feat, in_feat)
#   bmain   (88, 1)       packed [b1; b2; b3; b4] column slab
#   gate_a/b (ATT_HID,4)  packed [w5[:,0], w5[:,1], b5, w6^T]
#   b6      (1, 2)        [b6a, b6b]
#   gseg    (M, P)        column -> per-problem mean (already scaled 1/(HID*B))
#   gbrd    (P, M)        per-problem value -> broadcast back to columns
# ----------------------------------------------------------------------------
def _fused_kernel(x_ref, n_ref, snr_ref,
                  hmat_ref, w1_ref, w2_ref, w3_ref, w4_ref,
                  bmain_ref, gate_a_ref, gate_b_ref, b6_ref,
                  gseg_ref, gbrd_ref,
                  out_ref):
    f32 = jnp.float32
    x = x_ref[...]                          # (IN_DIM, M)
    snr = snr_ref[...]                      # (1, M)
    m_cols = x.shape[1]

    b1 = bmain_ref[_B1_OFF:_B1_OFF + HID, :]        # (HID, 1)
    b2 = bmain_ref[_B2_OFF:_B2_OFF + CH, :]         # (CH, 1)
    b3 = bmain_ref[_B3_OFF:_B3_OFF + HID, :]        # (HID, 1)
    b4 = bmain_ref[_B4_OFF:_B4_OFF + OUT_DIM, :]    # (OUT_DIM, 1)
    b6 = b6_ref[...]                                # (1, 2)

    def se_gate(act, gate_ref, b6_col):
        # Per-problem scalar SE gate (mean -> 2x8 MLP -> sigmoid), computed
        # column-wise so every column of a problem carries the identical gate
        # value and no cross-lane reshapes are needed.  Pure VPU/XLU/EUP plus
        # two tiny segment matmuls; stays off the main MXU critical path.
        gp = gate_ref[...]                                      # (ATT_HID, 4)
        cs = jnp.sum(act, axis=0, keepdims=True)                # (1, M) sublane reduce
        cs8 = jnp.broadcast_to(cs, (ATT_HID, m_cols))           # (ATT_HID, M)
        seg = jnp.dot(cs8, gseg_ref[...],
                      preferred_element_type=f32)               # (ATT_HID, P) = per-problem mean
        mean_b = jnp.dot(seg, gbrd_ref[...],
                         preferred_element_type=f32)            # (ATT_HID, M)
        h = jnp.maximum(mean_b * gp[:, 0:1] + snr * gp[:, 1:2] + gp[:, 2:3], 0.0)
        return jax.nn.sigmoid(
            jnp.sum(gp[:, 3:4] * h, axis=0, keepdims=True) + b6_col)   # (1, M)

    # ---- encoder layer 1 + ReLU ----
    x1 = jnp.maximum(
        jnp.dot(w1_ref[...], x, preferred_element_type=f32) + b1, 0.0)      # (HID, M)

    # ---- encoder layer 2; bias & scalar SE gate commute past the matmul,
    #      so the big MXU dot is issued first and the gate chain hides under it
    t = jnp.dot(w2_ref[...], x1, preferred_element_type=f32)                # (CH, M)
    a1 = se_gate(x1, gate_a_ref, b6[0:1, 0:1])
    x2 = a1 * t + b2                                                        # (CH, M)

    # ---- power normalisation per column: sqrt(CH)*sqrt(0.5) * x / ||x|| ----
    scale = (CH ** 0.5) * (0.5 ** 0.5)
    inv_norm = lax.rsqrt(jnp.sum(x2 * x2, axis=0, keepdims=True))           # (1, M)
    xn = (scale * inv_norm) * x2

    # ---- channel: causal interleaved complex taps == one (CH,CH) matmul ----
    y = jnp.dot(hmat_ref[...], xn, preferred_element_type=f32) + n_ref[...]  # (CH, M)

    # ---- decoder layer 1 + ReLU ----
    x3 = jnp.maximum(
        jnp.dot(w3_ref[...], y, preferred_element_type=f32) + b3, 0.0)      # (HID, M)

    # ---- decoder layer 2, gate hoisted the same way ----
    t2 = jnp.dot(w4_ref[...], x3, preferred_element_type=f32)               # (OUT_DIM, M)
    a2 = se_gate(x3, gate_b_ref, b6[0:1, 1:2])

    out_ref[...] = a2 * t2 + b4                                             # (OUT_DIM, M)


# ----------------------------------------------------------------------------
# Host-side helpers (numpy; no traced scatter ops).
# ----------------------------------------------------------------------------
def _toeplitz_channel_matrix_np(h):
    """(CH, CH) real matrix such that  x_row @ Hm  == complex_mul_taps(h, x_row)."""
    h = np.asarray(h, np.float32)
    n_taps = h.shape[0] // 2
    hm = np.zeros((CH, CH), np.float32)
    for i in range(CH // 2):
        for j in range(n_taps):
            if i - j >= 0:
                hr, hi = float(h[2 * j]), float(h[2 * j + 1])
                hm[2 * (i - j), 2 * i] += hr
                hm[2 * (i - j) + 1, 2 * i] += -hi
                hm[2 * (i - j), 2 * i + 1] += hi
                hm[2 * (i - j) + 1, 2 * i + 1] += hr
    return hm


def _choose_problems_per_step(num):
    # P*B must be a multiple of 128 lanes (P multiple of 8); keep grid >= 2
    # steps whenever possible so both v7x TensorCores get work.
    for p in (64, 32, 16, 8):
        if num >= 2 * p:
            return p
    return 8


# ----------------------------------------------------------------------------
# Wrapper: layout plumbing (feature-major transposes), padding, pallas_call.
# ----------------------------------------------------------------------------
def attention_net_dnn_forward_batched(xs, ns, h, snrs, params, problems_per_step=None):
    """NUM independent forwards: xs (NUM,B,IN_DIM), ns (NUM,B,CH), snrs (NUM,)."""
    num = xs.shape[0]
    p_step = problems_per_step or _choose_problems_per_step(num)
    assert p_step % 8 == 0
    num_pad = ((num + p_step - 1) // p_step) * p_step
    grid = (num_pad // p_step,)
    m_step = p_step * B              # lanes per grid step (multiple of 128)
    m_tot = num_pad * B

    f32 = jnp.float32
    xs = jnp.asarray(xs, f32)
    ns = jnp.asarray(ns, f32)
    snrs = jnp.asarray(snrs, f32).reshape(-1)
    if num_pad != num:
        pad = num_pad - num
        xs = jnp.concatenate([xs, jnp.ones((pad, B, IN_DIM), f32)], axis=0)
        ns = jnp.concatenate([ns, jnp.zeros((pad, B, CH), f32)], axis=0)
        snrs = jnp.concatenate([snrs, jnp.zeros((pad,), f32)], axis=0)

    # feature-major (lane-dense) layout: features -> sublanes, problem*row -> lanes
    x_fm = jnp.transpose(xs, (2, 0, 1)).reshape(IN_DIM, m_tot)
    n_fm = jnp.transpose(ns, (2, 0, 1)).reshape(CH, m_tot)
    snr_b = jnp.broadcast_to(snrs[:, None], (num_pad, B)).reshape(1, m_tot)

    # host-built constants
    hmat_fm = jnp.asarray(_toeplitz_channel_matrix_np(np.asarray(h)).T)      # column layout
    grp = np.arange(m_step) // B
    gseg = jnp.asarray((grp[:, None] == np.arange(p_step)[None, :])
                       .astype(np.float32) / float(HID * B))                 # (m_step, P)
    gbrd = jnp.asarray((np.arange(p_step)[:, None] == grp[None, :])
                       .astype(np.float32))                                  # (P, m_step)

    bmain = jnp.concatenate(
        [jnp.asarray(params[k], f32).reshape(-1, 1) for k in ("b1", "b2", "b3", "b4")],
        axis=0)                                                              # (88, 1)

    def gate_slab(w5, b5, w6):
        w5 = jnp.asarray(w5, f32)
        return jnp.concatenate(
            [w5[:, 0:1], w5[:, 1:2],
             jnp.asarray(b5, f32).reshape(-1, 1),
             jnp.asarray(w6, f32).reshape(-1, 1)], axis=1)                   # (ATT_HID, 4)

    gate_a = gate_slab(params["w5a"], params["b5a"], params["w6a"])
    gate_b = gate_slab(params["w5b"], params["b5b"], params["w6b"])
    b6 = jnp.concatenate([jnp.asarray(params["b6a"], f32).reshape(1, 1),
                          jnp.asarray(params["b6b"], f32).reshape(1, 1)], axis=1)

    w1 = jnp.asarray(params["w1"], f32)   # (HID, IN_DIM) original orientation
    w2 = jnp.asarray(params["w2"], f32)   # (CH, HID)
    w3 = jnp.asarray(params["w3"], f32)   # (HID, CH)
    w4 = jnp.asarray(params["w4"], f32)   # (OUT_DIM, HID)

    def col_block(rows):
        # per-step block covering P problems: (rows, m_step) at column block g
        return pl.BlockSpec((rows, m_step), lambda g: (0, g))

    def resident(arr):
        # full array, constant block index -> stays VMEM-resident across steps
        return pl.BlockSpec(arr.shape, lambda g: (0, 0))

    operands = (x_fm, n_fm, snr_b,
                hmat_fm, w1, w2, w3, w4,
                bmain, gate_a, gate_b, b6, gseg, gbrd)
    in_specs = ([col_block(IN_DIM), col_block(CH), col_block(1)]
                + [resident(a) for a in operands[3:]])

    out_fm = pl.pallas_call(
        _fused_kernel,
        grid=grid,
        in_specs=in_specs,
        out_specs=pl.BlockSpec((OUT_DIM, m_step), lambda g: (0, g)),
        out_shape=jax.ShapeDtypeStruct((OUT_DIM, m_tot), jnp.float32),
        compiler_params=pltpu.CompilerParams(dimension_semantics=("parallel",)),
    )(*operands)

    out = jnp.transpose(out_fm.reshape(OUT_DIM, num_pad, B), (1, 2, 0))
    return out[:num]


def attention_net_dnn_forward(x, n, h, snr, params):
    """Single-problem call, matching the original module's forward signature."""
    out = attention_net_dnn_forward_batched(
        x[None], n[None], h, jnp.asarray(snr, jnp.float32).reshape(1), params)
    return out[0]


# ----------------------------------------------------------------------------
# Plain-JAX helpers (glue + reference for verification).
# ----------------------------------------------------------------------------
def complex_mul_taps_ref(h, x):
    """Interleaved complex multi-tap convolution (causal), pure JAX reference."""
    n_taps = h.shape[0] // 2
    n_complex = x.shape[1] // 2
    y = jnp.zeros_like(x)
    for i in range(n_complex):
        for j in range(n_taps):
            if i - j >= 0:
                hr, hi = h[2 * j], h[2 * j + 1]
                xr = x[:, 2 * (i - j)]
                xi = x[:, 2 * (i - j) + 1]
                y = y.at[:, 2 * i].add(hr * xr - hi * xi)
                y = y.at[:, 2 * i + 1].add(hr * xi + hi * xr)
    return y


def pilot_est(h, n, pilot):
    # TODO(synk): exact pilot_est() from the FYP repo is unavailable; h_est is never
    # consumed by the forward pass, only a scalar SNR estimate is, computed here as
    # received-pilot power over noise power.
    rx_clean = complex_mul_taps_ref(h, pilot)
    sig_p = jnp.mean(rx_clean ** 2)
    noise_p = jnp.mean(n[0:1, :] ** 2)
    return sig_p / noise_p


def reference_forward(x, n, h, snr, p):
    x1 = jnp.maximum(x @ p["w1"].T + p["b1"], 0.0)
    mv = jnp.stack([jnp.mean(x1), snr]).reshape(1, 2)
    a = jax.nn.sigmoid(jnp.maximum(mv @ p["w5a"].T + p["b5a"], 0.0) @ p["w6a"].T + p["b6a"])
    x1 = x1 * a
    x2 = x1 @ p["w2"].T + p["b2"]
    xn = (x2.shape[1] ** 0.5) * (0.5 ** 0.5) * x2 / jnp.linalg.norm(x2, axis=1, keepdims=True)
    y = complex_mul_taps_ref(h, xn) + n
    x3 = jnp.maximum(y @ p["w3"].T + p["b3"], 0.0)
    mv2 = jnp.stack([jnp.mean(x3), snr]).reshape(1, 2)
    a2 = jax.nn.sigmoid(jnp.maximum(mv2 @ p["w5b"].T + p["b5b"], 0.0) @ p["w6b"].T + p["b6b"])
    x3 = x3 * a2
    return x3 @ p["w4"].T + p["b4"]


# ----------------------------------------------------------------------------
if __name__ == "__main__":
    key = jax.random.PRNGKey(0)
    keys = jax.random.split(key, 16)

    def w(k, shape, s=0.2):
        return jax.random.normal(k, shape, jnp.float32) * s

    # var[] layout (if_bias=True, if_RTN=False):
    #   var[0..1]=w1,b1  var[2..3]=w2,b2  var[4..5]=w3,b3  var[6..7]=w4,b4
    #   var[8..11]=attn-MLP #1 (w5,b5,w6,b6)   var[12..15]=attn-MLP #2
    params = {
        "w1": w(keys[0], (HID, IN_DIM)),   "b1": w(keys[1], (HID,), 0.05),
        "w2": w(keys[2], (CH, HID)),       "b2": w(keys[3], (CH,), 0.05),
        "w3": w(keys[4], (HID, CH)),       "b3": w(keys[5], (HID,), 0.05),
        "w4": w(keys[6], (OUT_DIM, HID)),  "b4": w(keys[7], (OUT_DIM,), 0.05),
        "w5a": w(keys[8], (ATT_HID, 2)),   "b5a": w(keys[9], (ATT_HID,), 0.05),
        "w6a": w(keys[10], (1, ATT_HID)),  "b6a": w(keys[11], (1,), 0.05),
        "w5b": w(keys[12], (ATT_HID, 2)),  "b5b": w(keys[13], (ATT_HID,), 0.05),
        "w6b": w(keys[14], (1, ATT_HID)),  "b6b": w(keys[15], (1,), 0.05),
    }

    NUM = 16                                          # Monte-Carlo repetitions
    kx, kn = jax.random.split(jax.random.PRNGKey(1), 2)
    xs = jax.random.normal(kx, (NUM, B, IN_DIM), jnp.float32)

    noise_var = 0.1                                   # true_snr=False branch
    ns = jnp.sqrt(noise_var / 2.0) * jax.random.normal(kn, (NUM, B, CH), jnp.float32)

    # 3 complex channel taps, interleaved [re, im, re, im, re, im]
    h = jnp.array([1.0, 0.0, 0.35, -0.2, 0.1, 0.05], jnp.float32)

    pilot = jnp.array([-0.5, 0.5, 0.5, -0.5, -0.5, -0.5, 0.5, 0.5],
                      jnp.float32).reshape(1, -1)
    snrs = jnp.stack([pilot_est(h, ns[k], pilot) for k in range(NUM)])

    # batched (grid) forward: 8 problems / 128 lane-columns per grid step, 2 steps
    out = jax.block_until_ready(
        attention_net_dnn_forward_batched(xs, ns, h, snrs, params))
    assert out.shape == (NUM, B, OUT_DIM), out.shape

    for k in range(NUM):
        ref = reference_forward(xs[k], ns[k], h, snrs[k], params)
        err = float(jnp.max(jnp.abs(out[k] - ref)))
        assert jnp.allclose(out[k], ref, rtol=1e-3, atol=1e-3), (k, err)

    # single-call path (original module semantics: one forward per call)
    out1 = jax.block_until_ready(
        attention_net_dnn_forward(xs[0], ns[0], h, snrs[0], params))
    assert jnp.allclose(out1, out[0], rtol=1e-4, atol=1e-4)

    print("KERNEL_OK")
</pallas_src>

<mosaic_0001>
module attributes {stable_mosaic.version = 11 : i64} {
  func.func @_fused_kernel(%arg0: i32, %arg1: memref<16x128xf32, #tpu.memory_space<vmem>>, %arg2: memref<8x128xf32, #tpu.memory_space<vmem>>, %arg3: memref<1x128xf32, #tpu.memory_space<vmem>>, %arg4: memref<8x8xf32, #tpu.memory_space<vmem>>, %arg5: memref<32x16xf32, #tpu.memory_space<vmem>>, %arg6: memref<8x32xf32, #tpu.memory_space<vmem>>, %arg7: memref<32x8xf32, #tpu.memory_space<vmem>>, %arg8: memref<16x32xf32, #tpu.memory_space<vmem>>, %arg9: memref<88x1xf32, #tpu.memory_space<vmem>>, %arg10: memref<8x4xf32, #tpu.memory_space<vmem>>, %arg11: memref<8x4xf32, #tpu.memory_space<vmem>>, %arg12: memref<1x2xf32, #tpu.memory_space<vmem>>, %arg13: memref<128x8xf32, #tpu.memory_space<vmem>>, %arg14: memref<8x128xf32, #tpu.memory_space<vmem>>, %arg15: memref<16x128xf32, #tpu.memory_space<vmem>>) attributes {dimension_semantics = [#tpu.dimension_semantics<parallel>], iteration_bounds = array<i64: 2>, scalar_prefetch = 0 : i64, scratch_operands = 0 : i64, tpu.core_type = #tpu.core_type<tc>, window_params = [{transform_indices = @transform_0, window_bounds = array<i64: 16, 128>}, {transform_indices = @transform_1, window_bounds = array<i64: 8, 128>}, {transform_indices = @transform_2, window_bounds = array<i64: 1, 128>}, {pipeline_mode = #tpu.pipeline_mode<synchronous>, transform_indices = @transform_3, window_bounds = array<i64: 8, 8>}, {pipeline_mode = #tpu.pipeline_mode<synchronous>, transform_indices = @transform_4, window_bounds = array<i64: 32, 16>}, {pipeline_mode = #tpu.pipeline_mode<synchronous>, transform_indices = @transform_5, window_bounds = array<i64: 8, 32>}, {pipeline_mode = #tpu.pipeline_mode<synchronous>, transform_indices = @transform_6, window_bounds = array<i64: 32, 8>}, {pipeline_mode = #tpu.pipeline_mode<synchronous>, transform_indices = @transform_7, window_bounds = array<i64: 16, 32>}, {pipeline_mode = #tpu.pipeline_mode<synchronous>, transform_indices = @transform_8, window_bounds = array<i64: 88, 1>}, {pipeline_mode = #tpu.pipeline_mode<synchronous>, transform_indices = @transform_9, window_bounds = array<i64: 8, 4>}, {pipeline_mode = #tpu.pipeline_mode<synchronous>, transform_indices = @transform_10, window_bounds = array<i64: 8, 4>}, {pipeline_mode = #tpu.pipeline_mode<synchronous>, transform_indices = @transform_11, window_bounds = array<i64: 1, 2>}, {pipeline_mode = #tpu.pipeline_mode<synchronous>, transform_indices = @transform_12, window_bounds = array<i64: 128, 8>}, {pipeline_mode = #tpu.pipeline_mode<synchronous>, transform_indices = @transform_13, window_bounds = array<i64: 8, 128>}, {transform_indices = @transform_14, window_bounds = array<i64: 16, 128>}]} {
    %c0 = arith.constant 0 : index
    %c0_0 = arith.constant 0 : index
    %0 = vector.load %arg1[%c0, %c0_0] : memref<16x128xf32, #tpu.memory_space<vmem>>, vector<16x128xf32>
    %c0_1 = arith.constant 0 : index
    %c0_2 = arith.constant 0 : index
    %1 = vector.load %arg3[%c0_1, %c0_2] : memref<1x128xf32, #tpu.memory_space<vmem>>, vector<1x128xf32>
    %c0_3 = arith.constant 0 : index
    %c0_4 = arith.constant 0 : index
    %2 = vector.load %arg9[%c0_3, %c0_4] : memref<88x1xf32, #tpu.memory_space<vmem>>, vector<32x1xf32>
    %c32 = arith.constant 32 : index
    %c0_5 = arith.constant 0 : index
    %3 = vector.load %arg9[%c32, %c0_5] : memref<88x1xf32, #tpu.memory_space<vmem>>, vector<8x1xf32>
    %c40 = arith.constant 40 : index
    %c0_6 = arith.constant 0 : index
    %4 = vector.load %arg9[%c40, %c0_6] : memref<88x1xf32, #tpu.memory_space<vmem>>, vector<32x1xf32>
    %c72 = arith.constant 72 : index
    %c0_7 = arith.constant 0 : index
    %5 = vector.load %arg9[%c72, %c0_7] : memref<88x1xf32, #tpu.memory_space<vmem>>, vector<16x1xf32>
    %c0_8 = arith.constant 0 : index
    %c0_9 = arith.constant 0 : index
    %6 = vector.load %arg12[%c0_8, %c0_9] : memref<1x2xf32, #tpu.memory_space<vmem>>, vector<1x2xf32>
    %c0_10 = arith.constant 0 : index
    %c0_11 = arith.constant 0 : index
    %7 = vector.load %arg5[%c0_10, %c0_11] : memref<32x16xf32, #tpu.memory_space<vmem>>, vector<32x16xf32>
    %cst = arith.constant dense<0.000000e+00> : vector<32x128xf32>
    %8 = tpu.matmul %7, %0, %cst {dimension_numbers = #tpu.dot_dimension_numbers<[1], [0], [0], [1], [0, 0, 1, 1], [], []>} : vector<32x16xf32>, vector<16x128xf32>, vector<32x128xf32> -> vector<32x128xf32>
    %9 = vector.broadcast %2 : vector<32x1xf32> to vector<32x128xf32>
    %10 = arith.addf %8, %9 : vector<32x128xf32>
    %cst_12 = arith.constant 0.000000e+00 : f32
    %11 = vector.broadcast %cst_12 : f32 to vector<32x128xf32>
    %12 = arith.maximumf %10, %11 : vector<32x128xf32>
    %c0_13 = arith.constant 0 : index
    %c0_14 = arith.constant 0 : index
    %13 = vector.load %arg6[%c0_13, %c0_14] : memref<8x32xf32, #tpu.memory_space<vmem>>, vector<8x32xf32>
    %cst_15 = arith.constant dense<0.000000e+00> : vector<8x128xf32>
    %14 = tpu.matmul %13, %12, %cst_15 {dimension_numbers = #tpu.dot_dimension_numbers<[1], [0], [0], [1], [0, 0, 1, 1], [], []>} : vector<8x32xf32>, vector<32x128xf32>, vector<8x128xf32> -> vector<8x128xf32>
    %15 = vector.extract_strided_slice %6 {offsets = [0, 0], sizes = [1, 1], strides = [1, 1]} : vector<1x2xf32> to vector<1x1xf32>
    %c0_16 = arith.constant 0 : index
    %c0_17 = arith.constant 0 : index
    %16 = vector.load %arg10[%c0_16, %c0_17] : memref<8x4xf32, #tpu.memory_space<vmem>>, vector<8x4xf32>
    %cst_18 = arith.constant dense<0.000000e+00> : vector<128xf32>
    %17 = vector.multi_reduction <add>, %12, %cst_18 [0] : vector<32x128xf32> to vector<128xf32>
    %18 = vector.shape_cast %17 : vector<128xf32> to vector<1x128xf32>
    %19 = vector.shape_cast %18 : vector<1x128xf32> to vector<1x128xf32>
    %20 = vector.broadcast %19 : vector<1x128xf32> to vector<8x128xf32>
    %c0_19 = arith.constant 0 : index
    %c0_20 = arith.constant 0 : index
    %21 = vector.load %arg13[%c0_19, %c0_20] : memref<128x8xf32, #tpu.memory_space<vmem>>, vector<128x8xf32>
    %cst_21 = arith.constant dense<0.000000e+00> : vector<8x8xf32>
    %22 = tpu.matmul %20, %21, %cst_21 {dimension_numbers = #tpu.dot_dimension_numbers<[1], [0], [0], [1], [0, 0, 1, 1], [], []>} : vector<8x128xf32>, vector<128x8xf32>, vector<8x8xf32> -> vector<8x8xf32>
    %c0_22 = arith.constant 0 : index
    %c0_23 = arith.constant 0 : index
    %23 = vector.load %arg14[%c0_22, %c0_23] : memref<8x128xf32, #tpu.memory_space<vmem>>, vector<8x128xf32>
    %cst_24 = arith.constant dense<0.000000e+00> : vector<8x128xf32>
    %24 = tpu.matmul %22, %23, %cst_24 {dimension_numbers = #tpu.dot_dimension_numbers<[1], [0], [0], [1], [0, 0, 1, 1], [], []>} : vector<8x8xf32>, vector<8x128xf32>, vector<8x128xf32> -> vector<8x128xf32>
    %25 = vector.extract_strided_slice %16 {offsets = [0, 0], sizes = [8, 1], strides = [1, 1]} : vector<8x4xf32> to vector<8x1xf32>
    %26 = vector.broadcast %25 : vector<8x1xf32> to vector<8x128xf32>
    %27 = arith.mulf %24, %26 : vector<8x128xf32>
    %28 = vector.extract_strided_slice %16 {offsets = [0, 1], sizes = [8, 1], strides = [1, 1]} : vector<8x4xf32> to vector<8x1xf32>
    %29 = vector.broadcast %1 : vector<1x128xf32> to vector<8x128xf32>
    %30 = vector.broadcast %28 : vector<8x1xf32> to vector<8x128xf32>
    %31 = arith.mulf %29, %30 : vector<8x128xf32>
    %32 = arith.addf %27, %31 : vector<8x128xf32>
    %33 = vector.extract_strided_slice %16 {offsets = [0, 2], sizes = [8, 1], strides = [1, 1]} : vector<8x4xf32> to vector<8x1xf32>
    %34 = vector.broadcast %33 : vector<8x1xf32> to vector<8x128xf32>
    %35 = arith.addf %32, %34 : vector<8x128xf32>
    %cst_25 = arith.constant 0.000000e+00 : f32
    %36 = vector.broadcast %cst_25 : f32 to vector<8x128xf32>
    %37 = arith.maximumf %35, %36 : vector<8x128xf32>
    %38 = vector.extract_strided_slice %16 {offsets = [0, 3], sizes = [8, 1], strides = [1, 1]} : vector<8x4xf32> to vector<8x1xf32>
    %39 = vector.broadcast %38 : vector<8x1xf32> to vector<8x128xf32>
    %40 = arith.mulf %39, %37 : vector<8x128xf32>
    %cst_26 = arith.constant dense<0.000000e+00> : vector<128xf32>
    %41 = vector.multi_reduction <add>, %40, %cst_26 [0] : vector<8x128xf32> to vector<128xf32>
    %42 = vector.shape_cast %41 : vector<128xf32> to vector<1x128xf32>
    %43 = vector.broadcast %15 : vector<1x1xf32> to vector<1x128xf32>
    %44 = arith.addf %42, %43 : vector<1x128xf32>
    %45 = arith.negf %44 : vector<1x128xf32>
    %46 = math.exp %45 : vector<1x128xf32>
    %cst_27 = arith.constant 1.000000e+00 : f32
    %47 = vector.broadcast %cst_27 : f32 to vector<1x128xf32>
    %48 = arith.addf %47, %46 : vector<1x128xf32>
    %49 = arith.divf %47, %48 : vector<1x128xf32>
    %50 = vector.broadcast %49 : vector<1x128xf32> to vector<8x128xf32>
    %51 = arith.mulf %50, %14 : vector<8x128xf32>
    %52 = vector.broadcast %3 : vector<8x1xf32> to vector<8x128xf32>
    %53 = arith.addf %51, %52 : vector<8x128xf32>
    %54 = arith.mulf %53, %53 : vector<8x128xf32>
    %cst_28 = arith.constant dense<0.000000e+00> : vector<128xf32>
    %55 = vector.multi_reduction <add>, %54, %cst_28 [0] : vector<8x128xf32> to vector<128xf32>
    %56 = vector.shape_cast %55 : vector<128xf32> to vector<1x128xf32>
    %57 = math.rsqrt %56 : vector<1x128xf32>
    %cst_29 = arith.constant 2.000000e+00 : f32
    %58 = vector.broadcast %cst_29 : f32 to vector<1x128xf32>
    %59 = arith.mulf %58, %57 : vector<1x128xf32>
    %60 = vector.broadcast %59 : vector<1x128xf32> to vector<8x128xf32>
    %61 = arith.mulf %60, %53 : vector<8x128xf32>
    %c0_30 = arith.constant 0 : index
    %c0_31 = arith.constant 0 : index
    %62 = vector.load %arg4[%c0_30, %c0_31] : memref<8x8xf32, #tpu.memory_space<vmem>>, vector<8x8xf32>
    %cst_32 = arith.constant dense<0.000000e+00> : vector<8x128xf32>
    %63 = tpu.matmul %62, %61, %cst_32 {dimension_numbers = #tpu.dot_dimension_numbers<[1], [0], [0], [1], [0, 0, 1, 1], [], []>} : vector<8x8xf32>, vector<8x128xf32>, vector<8x128xf32> -> vector<8x128xf32>
    %c0_33 = arith.constant 0 : index
    %c0_34 = arith.constant 0 : index
    %64 = vector.load %arg2[%c0_33, %c0_34] : memref<8x128xf32, #tpu.memory_space<vmem>>, vector<8x128xf32>
    %65 = arith.addf %63, %64 : vector<8x128xf32>
    %c0_35 = arith.constant 0 : index
    %c0_36 = arith.constant 0 : index
    %66 = vector.load %arg7[%c0_35, %c0_36] : memref<32x8xf32, #tpu.memory_space<vmem>>, vector<32x8xf32>
    %cst_37 = arith.constant dense<0.000000e+00> : vector<32x128xf32>
    %67 = tpu.matmul %66, %65, %cst_37 {dimension_numbers = #tpu.dot_dimension_numbers<[1], [0], [0], [1], [0, 0, 1, 1], [], []>} : vector<32x8xf32>, vector<8x128xf32>, vector<32x128xf32> -> vector<32x128xf32>
    %68 = vector.broadcast %4 : vector<32x1xf32> to vector<32x128xf32>
    %69 = arith.addf %67, %68 : vector<32x128xf32>
    %cst_38 = arith.constant 0.000000e+00 : f32
    %70 = vector.broadcast %cst_38 : f32 to vector<32x128xf32>
    %71 = arith.maximumf %69, %70 : vector<32x128xf32>
    %c0_39 = arith.constant 0 : index
    %c0_40 = arith.constant 0 : index
    %72 = vector.load %arg8[%c0_39, %c0_40] : memref<16x32xf32, #tpu.memory_space<vmem>>, vector<16x32xf32>
    %cst_41 = arith.constant dense<0.000000e+00> : vector<16x128xf32>
    %73 = tpu.matmul %72, %71, %cst_41 {dimension_numbers = #tpu.dot_dimension_numbers<[1], [0], [0], [1], [0, 0, 1, 1], [], []>} : vector<16x32xf32>, vector<32x128xf32>, vector<16x128xf32> -> vector<16x128xf32>
    %74 = vector.extract_strided_slice %6 {offsets = [0, 1], sizes = [1, 1], strides = [1, 1]} : vector<1x2xf32> to vector<1x1xf32>
    %c0_42 = arith.constant 0 : index
    %c0_43 = arith.constant 0 : index
    %75 = vector.load %arg11[%c0_42, %c0_43] : memref<8x4xf32, #tpu.memory_space<vmem>>, vector<8x4xf32>
    %cst_44 = arith.constant dense<0.000000e+00> : vector<128xf32>
    %76 = vector.multi_reduction <add>, %71, %cst_44 [0] : vector<32x128xf32> to vector<128xf32>
    %77 = vector.shape_cast %76 : vector<128xf32> to vector<1x128xf32>
    %78 = vector.shape_cast %77 : vector<1x128xf32> to vector<1x128xf32>
    %79 = vector.broadcast %78 : vector<1x128xf32> to vector<8x128xf32>
    %c0_45 = arith.constant 0 : index
    %c0_46 = arith.constant 0 : index
    %80 = vector.load %arg13[%c0_45, %c0_46] : memref<128x8xf32, #tpu.memory_space<vmem>>, vector<128x8xf32>
    %cst_47 = arith.constant dense<0.000000e+00> : vector<8x8xf32>
    %81 = tpu.matmul %79, %80, %cst_47 {dimension_numbers = #tpu.dot_dimension_numbers<[1], [0], [0], [1], [0, 0, 1, 1], [], []>} : vector<8x128xf32>, vector<128x8xf32>, vector<8x8xf32> -> vector<8x8xf32>
    %c0_48 = arith.constant 0 : index
    %c0_49 = arith.constant 0 : index
    %82 = vector.load %arg14[%c0_48, %c0_49] : memref<8x128xf32, #tpu.memory_space<vmem>>, vector<8x128xf32>
    %cst_50 = arith.constant dense<0.000000e+00> : vector<8x128xf32>
    %83 = tpu.matmul %81, %82, %cst_50 {dimension_numbers = #tpu.dot_dimension_numbers<[1], [0], [0], [1], [0, 0, 1, 1], [], []>} : vector<8x8xf32>, vector<8x128xf32>, vector<8x128xf32> -> vector<8x128xf32>
    %84 = vector.extract_strided_slice %75 {offsets = [0, 0], sizes = [8, 1], strides = [1, 1]} : vector<8x4xf32> to vector<8x1xf32>
    %85 = vector.broadcast %84 : vector<8x1xf32> to vector<8x128xf32>
    %86 = arith.mulf %83, %85 : vector<8x128xf32>
    %87 = vector.extract_strided_slice %75 {offsets = [0, 1], sizes = [8, 1], strides = [1, 1]} : vector<8x4xf32> to vector<8x1xf32>
    %88 = vector.broadcast %1 : vector<1x128xf32> to vector<8x128xf32>
    %89 = vector.broadcast %87 : vector<8x1xf32> to vector<8x128xf32>
    %90 = arith.mulf %88, %89 : vector<8x128xf32>
    %91 = arith.addf %86, %90 : vector<8x128xf32>
    %92 = vector.extract_strided_slice %75 {offsets = [0, 2], sizes = [8, 1], strides = [1, 1]} : vector<8x4xf32> to vector<8x1xf32>
    %93 = vector.broadcast %92 : vector<8x1xf32> to vector<8x128xf32>
    %94 = arith.addf %91, %93 : vector<8x128xf32>
    %cst_51 = arith.constant 0.000000e+00 : f32
    %95 = vector.broadcast %cst_51 : f32 to vector<8x128xf32>
    %96 = arith.maximumf %94, %95 : vector<8x128xf32>
    %97 = vector.extract_strided_slice %75 {offsets = [0, 3], sizes = [8, 1], strides = [1, 1]} : vector<8x4xf32> to vector<8x1xf32>
    %98 = vector.broadcast %97 : vector<8x1xf32> to vector<8x128xf32>
    %99 = arith.mulf %98, %96 : vector<8x128xf32>
    %cst_52 = arith.constant dense<0.000000e+00> : vector<128xf32>
    %100 = vector.multi_reduction <add>, %99, %cst_52 [0] : vector<8x128xf32> to vector<128xf32>
    %101 = vector.shape_cast %100 : vector<128xf32> to vector<1x128xf32>
    %102 = vector.broadcast %74 : vector<1x1xf32> to vector<1x128xf32>
    %103 = arith.addf %101, %102 : vector<1x128xf32>
    %104 = arith.negf %103 : vector<1x128xf32>
    %105 = math.exp %104 : vector<1x128xf32>
    %cst_53 = arith.constant 1.000000e+00 : f32
    %106 = vector.broadcast %cst_53 : f32 to vector<1x128xf32>
    %107 = arith.addf %106, %105 : vector<1x128xf32>
    %108 = arith.divf %106, %107 : vector<1x128xf32>
    %109 = vector.broadcast %108 : vector<1x128xf32> to vector<16x128xf32>
    %110 = arith.mulf %109, %73 : vector<16x128xf32>
    %111 = vector.broadcast %5 : vector<16x1xf32> to vector<16x128xf32>
    %112 = arith.addf %110, %111 : vector<16x128xf32>
    %c0_54 = arith.constant 0 : index
    %c0_55 = arith.constant 0 : index
    %113 = vector.load %arg15[%c0_54, %c0_55] : memref<16x128xf32, #tpu.memory_space<vmem>>, vector<16x128xf32>
    tpu.vector_store %arg15[%c0_54, %c0_55], %112 {strides = array<i32>} : memref<16x128xf32, #tpu.memory_space<vmem>>, vector<16x128xf32>,
    return
  }
  func.func @transform_0(%arg0: i32) -> (i32, i32) {
    %c0_i32 = arith.constant 0 : i32
    %c0_i32_0 = arith.constant 0 : i32
    return %c0_i32, %arg0 : i32, i32
  }
  func.func @transform_1(%arg0: i32) -> (i32, i32) {
    %c0_i32 = arith.constant 0 : i32
    %c0_i32_0 = arith.constant 0 : i32
    return %c0_i32, %arg0 : i32, i32
  }
  func.func @transform_2(%arg0: i32) -> (i32, i32) {
    %c0_i32 = arith.constant 0 : i32
    %c0_i32_0 = arith.constant 0 : i32
    return %c0_i32, %arg0 : i32, i32
  }
  func.func @transform_3(%arg0: i32) -> (i32, i32) {
    %c0_i32 = arith.constant 0 : i32
    %c0_i32_0 = arith.constant 0 : i32
    %c0_i32_1 = arith.constant 0 : i32
    return %c0_i32, %c0_i32_0 : i32, i32
  }
  func.func @transform_4(%arg0: i32) -> (i32, i32) {
    %c0_i32 = arith.constant 0 : i32
    %c0_i32_0 = arith.constant 0 : i32
    %c0_i32_1 = arith.constant 0 : i32
    return %c0_i32, %c0_i32_0 : i32, i32
  }
  func.func @transform_5(%arg0: i32) -> (i32, i32) {
    %c0_i32 = arith.constant 0 : i32
    %c0_i32_0 = arith.constant 0 : i32
    %c0_i32_1 = arith.constant 0 : i32
    return %c0_i32, %c0_i32_0 : i32, i32
  }
  func.func @transform_6(%arg0: i32) -> (i32, i32) {
    %c0_i32 = arith.constant 0 : i32
    %c0_i32_0 = arith.constant 0 : i32
    %c0_i32_1 = arith.constant 0 : i32
    return %c0_i32, %c0_i32_0 : i32, i32
  }
  func.func @transform_7(%arg0: i32) -> (i32, i32) {
    %c0_i32 = arith.constant 0 : i32
    %c0_i32_0 = arith.constant 0 : i32
    %c0_i32_1 = arith.constant 0 : i32
    return %c0_i32, %c0_i32_0 : i32, i32
  }
  func.func @transform_8(%arg0: i32) -> (i32, i32) {
    %c0_i32 = arith.constant 0 : i32
    %c0_i32_0 = arith.constant 0 : i32
    %c0_i32_1 = arith.constant 0 : i32
    return %c0_i32, %c0_i32_0 : i32, i32
  }
  func.func @transform_9(%arg0: i32) -> (i32, i32) {
    %c0_i32 = arith.constant 0 : i32
    %c0_i32_0 = arith.constant 0 : i32
    %c0_i32_1 = arith.constant 0 : i32
    return %c0_i32, %c0_i32_0 : i32, i32
  }
  func.func @transform_10(%arg0: i32) -> (i32, i32) {
    %c0_i32 = arith.constant 0 : i32
    %c0_i32_0 = arith.constant 0 : i32
    %c0_i32_1 = arith.constant 0 : i32
    return %c0_i32, %c0_i32_0 : i32, i32
  }
  func.func @transform_11(%arg0: i32) -> (i32, i32) {
    %c0_i32 = arith.constant 0 : i32
    %c0_i32_0 = arith.constant 0 : i32
    %c0_i32_1 = arith.constant 0 : i32
    return %c0_i32, %c0_i32_0 : i32, i32
  }
  func.func @transform_12(%arg0: i32) -> (i32, i32) {
    %c0_i32 = arith.constant 0 : i32
    %c0_i32_0 = arith.constant 0 : i32
    %c0_i32_1 = arith.constant 0 : i32
    return %c0_i32, %c0_i32_0 : i32, i32
  }
  func.func @transform_13(%arg0: i32) -> (i32, i32) {
    %c0_i32 = arith.constant 0 : i32
    %c0_i32_0 = arith.constant 0 : i32
    %c0_i32_1 = arith.constant 0 : i32
    return %c0_i32, %c0_i32_0 : i32, i32
  }
  func.func @transform_14(%arg0: i32) -> (i32, i32) {
    %c0_i32 = arith.constant 0 : i32
    %c0_i32_0 = arith.constant 0 : i32
    return %c0_i32, %arg0 : i32, i32
  }
}

</mosaic_0001>

<bundles_post_ra>
// kernel: tpu_custom_call.1
= control target key start
LH: loop header
LB: loop body
LE: loop exit
PB: predicated region body
PF: predicated region fallthrough
CT: control target
= control target key end

     0   :  { %s1679_s0 = inlined_call_operand.vmem [shape: f32[16,256], index: 0, kind: input, shape index: {}]   ;;  %s1680_s1 = inlined_call_operand.vmem [shape: f32[8,256], index: 1, kind: input, shape index: {}]   ;;  %s1681_s2 = inlined_call_operand.vmem [shape: f32[1,256], index: 2, kind: input, shape index: {}]   ;;  %s1682_s3 = inlined_call_operand.vmem [shape: f32[8,8], index: 3, kind: input, shape index: {}]   ;;  %s1683_s4 = inlined_call_operand.vmem [shape: f32[32,16], index: 4, kind: input, shape index: {}]   ;;  %s1684_s5 = inlined_call_operand.vmem [shape: f32[8,32], index: 5, kind: input, shape index: {}]   ;;  %s1685_s6 = inlined_call_operand.vmem [shape: f32[32,8], index: 6, kind: input, shape index: {}]   ;;  %s1686_s7 = inlined_call_operand.vmem [shape: f32[16,32], index: 7, kind: input, shape index: {}]   ;;  %s1687_s8 = inlined_call_operand.vmem [shape: f32[88,1], index: 8, kind: input, shape index: {}]   ;;  %s1688_s9 = inlined_call_operand.vmem [shape: f32[8,4], index: 9, kind: input, shape index: {}]   ;;  %s1689_s10 = inlined_call_operand.vmem [shape: f32[8,4], index: 10, kind: input, shape index: {}]   ;;  %s1690_s11 = inlined_call_operand.vmem [shape: f32[1,2], index: 11, kind: input, shape index: {}]   ;;  %s1691_s12 = inlined_call_operand.vmem [shape: f32[128,8], index: 12, kind: input, shape index: {}]   ;;  %s1692_s13 = inlined_call_operand.vmem [shape: f32[8,128], index: 13, kind: input, shape index: {}]   ;;  %s1693_s14 = inlined_call_operand.hbm [shape: f32[16,256], index: 14, kind: output, shape index: {}]  }
   0x1   :  { %1698 = sst [smem:[#allocation9_spill]] %s1679_s0 }
   0x2   :  { %1699 = sst [smem:[#allocation10_spill]] %s1680_s1 }
   0x3   :  { %19 = vsyncpa [#allocation4], 0 }
   0x4   :  { %21 = vsyncpa [#allocation4 + $0x1], 0  ;;  %s1400_s29 = smov 0   ;;  %s1402_s30 = smov 0  }
   0x5   :  { %s1404_s15 = smov 0   ;;  %s1406_s16 = smov 0  }
   0x6 LB: > { %1700 = sst [smem:[#allocation6_spill]] %s1312_s15  ;;  %s1421_s17 = sadd.s32 4294967295, %s1316_s16   ;;  %s1316_s16 = sphi %s1406_s16, %s1708_s16   ;;  %s1312_s15 = sphi %s1404_s15, %s1710_s15   ;;  %s1308_s30 = sphi %s1402_s30, %s1712_s30   ;;  %s1304_s29 = sphi %s1400_s29, %s1711_s29  }
   0x7   : > { %s1153_s18 = sadd.s32 4294967294, %s1316_s16   ;;  %s1425_s19 = sadd.s32 1, %s1316_s16  }
   0x8   : > { %1701 = sst [smem:[#allocation7_spill]] %s1425_s19  ;;  %s34_s20 = sadd.s32 1, %s1312_s15 }
   0x9   : > { %s31_s21 = ssub.s32 %s1316_s16, %s1425_s19  ;;  %p41_p0 = scmp.ne.s32.totalorder %s1312_s15, %s1308_s30 }
   0xa   : > { %p32_p1 = scmp.eq.s32.totalorder %s31_s21, 0  ;;  %p42_p2 = scmp.eq.s32.totalorder %s1316_s16, 0 }
   0xb   : > { %p354_p3 = scmp.eq.s32.totalorder %s1421_s17, 1  ;;  %p359_p4 = scmp.ne.s32.totalorder %s1308_s30, %s1304_s29 }
   0xc   : > { %s1437_s22 = scalar_select %p32_p1, %s1312_s15, %s34_s20  }
   0xd   : > { %p43_p5 = por %p42_p2, %p41_p0  ;;  %p1439_p6 = por %p354_p3, %p41_p0 }
   0xe   : > { %1702 = sst [smem:[#allocation8_spill]] %s1437_s22  ;;  %p360_p7 = scmp.eq.s32.totalorder %s1153_s18, 1 }
   0xf   : > { %p1155_p9 = scmp.ge.s32.totalorder %s1316_s16, 2 }
  0x10   : > { %p1443_p8 = por %p360_p7, %p359_p4 }
  0x11   : > { %409 = sbr.rel (%p1155_p9) target bundleno = 34 (0x22), region = 60 }
  0x16   : > { %412 = sbr.rel (!%p43_p5) target bundleno = 34 (0x22), region = 64  ;;  %s414_s25 = sand.u32 (%p43_p5), 1, %s1312_s15  }
  0x17   : > { %s1157_s26 = sshll.u32 (%p43_p5), %s1316_s16, 3  ;;  %s1156_s27 = sshll.u32 (%p43_p5), %s414_s25, 4 }
  0x18   : > { %s1705_s0 = sld [smem:[#allocation9_spill]] (%p43_p5)  ;;  %s416_s18 = scalar_lea.vmem (%p43_p5), [#allocation2], %s1156_s27 }
  0x1e   : > { %s418_s21 = scalar_lea.vmem %s1705_s0, %s1157_s26 }
  0x1f   : > { %v449_v0 = vld [vmem:[%s418_s21] sm:$0xff]  ;;  %v451_v1 = vld [vmem:[%s418_s21 + $0x10] sm:$0xff] }
  0x20   : > { %450 = vst [vmem:[%s416_s18] sm:$0xff] %v449_v0 }
  0x21   : > { %452 = vst [vmem:[%s416_s18 + $0x8] sm:$0xff] %v451_v1 }
  0x22 PF: > { %p1158_p10 = scmp.ge.s32.totalorder %s1316_s16, 1  ;;  %p470_p11 = scmp.lt.s32.totalorder %s1316_s16, 3 }
  0x24   : > { %p471_p12 = pnand %p1158_p10, %p470_p11 }
  0x25   : > { %s1695_s25 = sand.u32 (!%p471_p12), 1, %s1308_s30   ;;  %p529_p13 = scmp.lt.s32.totalorder (!%p471_p12), %s1421_s17, 1 }
  0x26   : > { %474 = sbr.rel (%p471_p12) target bundleno = 1197 (0x4ad), region = 110  ;;  %s1463_s26 = sshll.u32 (!%p471_p12), %s1695_s25, 4 }
  0x27   : > { %s479_s20 = scalar_lea.vmem (!%p471_p12), [#allocation2], %s1463_s26  ;;  %s1706_s1 = sld [smem:[#allocation10_spill]] (!%p471_p12) }
  0x28   : > { %s528_s22 = scalar_lea.vmem (!%p471_p12), [#allocation3], %s1463_s26  ;;  %s1274_s0 = scalar_lea.hbm (!%p471_p12), %s1693_s14, 32 }
  0x2b   : > { %v539_v2 = vld [vmem:[%s1687_s8] sm:$0xff]  ;;  %v1318_v3 = vmov 0   ;;  %v541_v4 = vld [vmem:[%s1687_s8 + $0x10] sm:$0xff]  ;;  %v537_v5 = vld [vmem:[%s479_s20 + $0x8] sm:$0xff]  ;;  %vm575_vm0 = vcmask 130048   ;;  %s1540_s27 = scalar_select %p529_p13, %s1421_s17, 1 }
  0x2c   : > { %1228 = vset.pattern.permute.xlu0 %v1318_v3  ;;  %1229 = vset.pattern.permute.xlu1 %v1318_v3  ;;  %v536_v6 = vld [vmem:[%s479_s20] sm:$0xff]  ;;  %v540_v8 = vld [vmem:[%s1687_s8 + $0x8] sm:$0xff]  ;;  %v542_v9 = vld [vmem:[%s1687_s8 + $0x18] sm:$0xff]  ;;  %v1319_v56 = vmov 2   ;;  %v1320_v57 = vmov 3   ;;  %vm622_vm1 = vcmask 261120  }
  0x2d   : > { %557 = vperm.xlu0 %1228, %v539_v2   ;;  %567 = vperm.xlu1 %1229, %v541_v4   ;;  %v551_v7 = vld [vmem:[%s1683_s4] sm:$0xff]  ;;  %v552_v10 = vld [vmem:[%s1683_s4 + $0x8] sm:$0xff]  ;;  %v553_v11 = vld [vmem:[%s1683_s4 + $0x10] sm:$0xff]  ;;  %s535_s20 = scalar_lea.vmem %s1681_s2, %s1540_s27  ;;  %v1321_v60 = vmov 1   ;;  %vm693_vm2 = vcmask 64512   ;;  %s1161_s28 = sshll.u32 %s1540_s27, 3 }
  0x2e   : > { %1230 = vset.pattern.permute.xlu2 %v1318_v3  ;;  %602 = vmatpush.msra.mxu0 %v537_v5  ;;  %v554_v12 = vld [vmem:[%s1683_s4 + $0x18] sm:$0xff]  ;;  %v670_v14 = vld [vmem:[%s1691_s12 + $0x70] sm:$0xff]  ;;  %v669_v15 = vld [vmem:[%s1691_s12 + $0x68] sm:$0xff]  ;;  %s532_s15 = scalar_lea.vmem %s1706_s1, %s1161_s28  ;;  %s1179_s28 = sshll.u32 %s1421_s17, 3 }
  0x2f   : > { %v671_v13 = vld [vmem:[%s1691_s12 + $0x78] sm:$0xff]  ;;  %v668_v16 = vld [vmem:[%s1691_s12 + $0x60] sm:$0xff]  ;;  %v666_v18 = vld [vmem:[%s1691_s12 + $0x50] sm:$0xff]  ;;  %s1707_s27 = sand.u32 1, %s1308_s30  }
  0x30   : > { %603 = vmatpush.msra.mxu0 %v536_v6  ;;  %672 = vmatpush.msra.mxu2 %v671_v13  ;;  %v667_v17 = vld [vmem:[%s1691_s12 + $0x58] sm:$0xff]  ;;  %v665_v19 = vld [vmem:[%s1691_s12 + $0x48] sm:$0xff]  ;;  %v664_v20 = vld [vmem:[%s1691_s12 + $0x40] sm:$0xff]  ;;  %s1050_s21 = scalar_lea.sflag [#allocation4], %s1707_s27 }
  0x31   : > { %1162 = vmatmul.msk.f32.vlgmr.msra.gmra.mxu0 %vm575_vm0, %v551_v7  ;;  %v663_v21 = vld [vmem:[%s1691_s12 + $0x38] sm:$0xff]  ;;  %v662_v22 = vld [vmem:[%s1691_s12 + $0x30] sm:$0xff]  ;;  %v661_v23 = vld [vmem:[%s1691_s12 + $0x28] sm:$0xff] }
  0x32   : > { %936 = vmatpush.msrb.mxu0 %v671_v13  ;;  %673 = vmatpush.msra.mxu2 %v670_v14  ;;  %v660_v25 = vld [vmem:[%s1691_s12 + $0x20] sm:$0xff]  ;;  %v659_v26 = vld [vmem:[%s1691_s12 + $0x18] sm:$0xff]  ;;  %v658_v27 = vld [vmem:[%s1691_s12 + $0x10] sm:$0xff] }
  0x33   : > { %v657_v29 = vld [vmem:[%s1691_s12 + $0x8] sm:$0xff]  ;;  %v656_v30 = vld [vmem:[%s1691_s12] sm:$0xff]  ;;  %v546_v61 = vld [vmem:[%s1687_s8 + $0x38] sm:$0xff] }
  0x34   : > { %937 = vmatpush.msrb.mxu0 %v670_v14  ;;  %674 = vmatpush.msra.mxu2 %v669_v15  ;;  %v1549_v54 = vld [vmem:[%s1692_s13] sm:$0xff]  ;;  %v544_v0 = vld [vmem:[%s1687_s8 + $0x28] sm:$0xff] }
  0x35   : > { %562 = vperm.xlu0 %1228, %v540_v8   ;;  %572 = vperm.xlu1 %1229, %v542_v9   ;;  %v646_v55 = vld [vmem:[%s1688_s9] sm:$0xff] }
  0x36   : > { %938 = vmatpush.msrb.mxu0 %v669_v15  ;;  %675 = vmatpush.msra.mxu2 %v668_v16  ;;  %v621_v58 = vld [vmem:[%s1684_s5] sm:$0xff] }
  0x37   : > { %712 = vmatpush.msra.mxu3 %v1549_v54  ;;  %719 = vperm.xlu2 %1230, %v646_v55   ;;  %v543_v59 = vld [vmem:[%s1687_s8 + $0x20] sm:$0xff] }
  0x38   : > { %939 = vmatpush.msrb.mxu0 %v668_v16  ;;  %676 = vmatpush.msra.mxu2 %v667_v17  ;;  %v550_v62 = vld [vmem:[%s1690_s11] sm:$0x1] }
  0x39   : > { %1163 = vmatmul.msk.f32.gmra.mxu0 %vm575_vm0, %v552_v10  ;;  %v1575_v63 = vld [vmem:[%s1689_s10] sm:$0xff] }
  0x3a   : > { %940 = vmatpush.msrb.mxu0 %v667_v17  ;;  %677 = vmatpush.msra.mxu2 %v666_v18  ;;  %v547_v2 = vld [vmem:[%s1687_s8 + $0x40] sm:$0xff] }
  0x3b   : > { %v1594_v5 = vld [vmem:[%s535_s20] ss:$0 sm:$0xff]  ;;  %s1061_s20 = sshll.u32 %s528_s22, 4  ;;  %s1062_s20 = int_to_ptr.vmem [resolvable:$true] %s1061_s20 }
  0x3c   : > { %941 = vmatpush.msrb.mxu0 %v666_v18  ;;  %678 = vmatpush.msra.mxu2 %v665_v19 }
  0x3d   : > { %1232 = vset.pattern.permute.xlu0 %v1319_v56  ;;  %1233 = vset.pattern.permute.xlu1 %v1320_v57 }
  0x3e   : > { %942 = vmatpush.msrb.mxu0 %v665_v19  ;;  %679 = vmatpush.msra.mxu2 %v664_v20 }
  0x3f   : > { %733 = vperm.xlu0 %1232, %v646_v55   ;;  %739 = vperm.xlu1 %1233, %v646_v55  }
  0x40   : > { %943 = vmatpush.msrb.mxu0 %v664_v20  ;;  %680 = vmatpush.msra.mxu2 %v663_v21 }
  0x41   : > { %1164 = vmatmul.msk.f32.gmra.mxu0 %vm575_vm0, %v553_v11  ;;  %1231 = vset.pattern.permute.xlu2 %v1321_v60 }
  0x42   : > { %944 = vmatpush.msrb.mxu0 %v663_v21  ;;  %681 = vmatpush.msra.mxu2 %v662_v22 }
  0x43   : > { %727 = vperm.xlu2 %1231, %v646_v55  }
  0x44   : > { %945 = vmatpush.msrb.mxu0 %v662_v22  ;;  %682 = vmatpush.msra.mxu2 %v661_v23 }
  0x46   : > { %946 = vmatpush.msrb.mxu0 %v661_v23  ;;  %683 = vmatpush.msra.mxu2 %v660_v25 }
  0x47   : > { %1235 = vset.pattern.permute.xlu1 %v1318_v3  ;;  %1236 = vset.pattern.permute.xlu0 %v1318_v3 }
  0x48   : > { %947 = vmatpush.msrb.mxu0 %v660_v25  ;;  %684 = vmatpush.msra.mxu2 %v659_v26 }
  0x49   : > { %1165 = vmatmul.msk.f32.gmra.mxu0 %vm575_vm0, %v554_v12  ;;  %778 = vperm.xlu1 %1235, %v543_v59  }
  0x4a   : > { %948 = vmatpush.msrb.mxu0 %v659_v26  ;;  %685 = vmatpush.msra.mxu2 %v658_v27 }
  0x4b   : > { %1234 = vset.pattern.permute.xlu2 %v1318_v3 }
  0x4c   : > { %949 = vmatpush.msrb.mxu0 %v658_v27  ;;  %686 = vmatpush.msra.mxu2 %v657_v29 }
  0x4d   : > { %751 = vperm.xlu2 %1234, %v550_v62  }
  0x4e   : > { %950 = vmatpush.msrb.mxu0 %v657_v29  ;;  %687 = vmatpush.msra.mxu2 %v656_v30 }
  0x50   : > { %951 = vmatpush.msrb.mxu0 %v656_v30 }
  0x51   : > { %842 = vperm.xlu1 %1235, %v546_v61   ;;  %v545_v61 = vld [vmem:[%s1687_s8 + $0x30] sm:$0xff] }
  0x52   : > { %837 = vperm.xlu0 %1236, %v545_v61  }
  0x55   : > { %832 = vperm.xlu2 %1234, %v544_v0  }
  0x59   : > { %981 = vperm.xlu1 %1235, %v1575_v63  }
  0x5a   : > { %1238 = vset.pattern.permute.xlu0 %v1319_v56  ;;  %v828_v56 = vld [vmem:[%s1685_s6 + $0x10] sm:$0xff] }
  0x5b   : > { %992 = vperm.xlu0 %1238, %v1575_v63  }
  0x5d   : > { %847 = vperm.xlu2 %1234, %v547_v2   ;;  %v826_v2 = vld [vmem:[%s1685_s6] sm:$0xff] }
  0x61   : > { %1239 = vset.pattern.permute.xlu1 %v1320_v57 }
  0x62   : > { %998 = vperm.xlu1 %1239, %v1575_v63  }
  0x63   : > { %1242 = vset.pattern.permute.xlu0 %v1318_v3 }
  0x65   : > { %1237 = vset.pattern.permute.xlu2 %v1321_v60  ;;  %v801_v60 = vld [vmem:[%s1682_s3] sm:$0xff] }
  0x66   : > { %986 = vperm.xlu2 %1237, %v1575_v63   ;;  %v829_v63 = vld [vmem:[%s1685_s6 + $0x18] sm:$0xff] }
  0x6a   : > { %1240 = vset.pattern.permute.xlu1 %v1318_v3 }
  0x6e   : > { %1009 = vperm.xlu2 %1237, %v550_v62   ;;  %v802_v62 = vld [vmem:[%s532_s15] sm:$0xff]  ;;  %s1060_s15 = scalar_lea.hbm %s1693_s14, %s1179_s28 }
  0x6f   : > { %s1063_s17 = sshll.u32 %s1060_s15, 4  ;;  %s1064_s17 = int_to_ptr.hbm [resolvable:$true] %s1063_s17 }
  0x70   : > { %s1268_s26 = sshra.s32 %s1064_s17, 4  ;;  %s1269_s26 = int_to_ptr.hbm [resolvable:$true] %s1268_s26 }
  0x71   : > { %s1270_s18 = scalar_lea.hbm %s1269_s26, 16  ;;  %p1275_p3 = scmp.lt.s32.totalorder %s1269_s26, %s1693_s14 }
  0x72   : > { %p1271_p0 = scmp.ne.s32.totalorder %s1269_s26, %s1270_s18  ;;  %p1276_p4 = scmp.lt.s32.totalorder %s1274_s0, %s1270_s18 }
  0x74   : > { %p1272_p1 = pnand %p1271_p0, %p1439_p6  ;;  %p1277_p5 = por %p1276_p4, %p1275_p3 }
  0x76   : > { %1241 = vset.pattern.permute.xlu2 %v1318_v3  ;;  %p1273_p2 = pneg %p1272_p1 }
  0x78   : > { %p1278_p7 = pnand %p1277_p5, %p1273_p2 }
  0x91   : > { %v720_v4 = vpop.permute.xlu2 %719 }
  0x9d   : > { %v728_v6 = vpop.permute.xlu2 %727 }
  0x9e   : > { %v730_v7 = vmul.f32 %v1594_v5, %v728_v6 }
  0x9f   : > { %v558_v28 = vpop.permute.xlu0 %557  ;;  %v568_v32 = vpop.permute.xlu1 %567 }
  0xa7   : > { %v563_v33 = vpop.permute.xlu0 %562  ;;  %v573_v41 = vpop.permute.xlu1 %572 }
  0xa8   : > { %v752_v20 = vpop.permute.xlu2 %751 }
  0xa9   : > { %v754_v21 = vperm.slane %v752_v20, 0 }
  0xae   : > { %v605_v24 = vpop.f32.mrf.mxu0 }
  0xaf   : > { %v606_v36 = vadd.f32 %v605_v24, %v558_v28 }
  0xb1   : > { %v617_v39 = vmax.f32 %v606_v36, 0.0  ;;  %v734_v10 = vpop.permute.xlu0 %733  ;;  %v740_v13 = vpop.permute.xlu1 %739 }
  0xb6   : > { %v608_v31 = vpop.f32.mrf.mxu0 }
  0xb7   : > { %v609_v35 = vadd.f32 %v608_v31, %v563_v33 }
  0xb9   : > { %v618_v38 = vmax.f32 %v609_v35, 0.0 }
  0xbb   : > { %v647_v43 = vadd.f32 %v618_v38, %v617_v39 }
  0xbe   : > { %v611_v34 = vpop.f32.mrf.mxu0 }
  0xbf   : > { %v612_v37 = vadd.f32 %v611_v34, %v568_v32 }
  0xc1   : > { %v619_v40 = vmax.f32 %v612_v37, 0.0 }
  0xc3   : > { %v648_v45 = vadd.f32 %v647_v43, %v619_v40 }
  0xc6   : > { %v614_v42 = vpop.f32.mrf.mxu0 }
  0xc7   : > { %v615_v44 = vadd.f32 %v614_v42, %v573_v41 }
  0xc9   : > { %v620_v46 = vmax.f32 %v615_v44, 0.0 }
  0xcb   : > { %v649_v47 = vadd.f32 %v648_v45, %v620_v46  ;;  %638 = vmatpush.msra.mxu1 %v620_v46 }
  0xcd   : > { %v650_v48 = vrot.slane %v649_v47, 4  ;;  %639 = vmatpush.msra.mxu1 %v619_v40  ;;  %v779_v40 = vpop.permute.xlu1 %778 }
  0xcf   : > { %v651_v49 = vadd.f32 %v650_v48, %v649_v47  ;;  %640 = vmatpush.msra.mxu1 %v618_v38 }
  0xd1   : > { %641 = vmatpush.msra.mxu1 %v617_v39  ;;  %v652_v50 = vrot.slane %v651_v49, 2 }
  0xd2   : > { %1166 = vmatmul.msk.f32.vlgmr.msra.gmra.mxu1 %vm622_vm1, %v621_v58 }
  0xd3   : > { %v653_v51 = vadd.f32 %v652_v50, %v651_v49 }
  0xd5   : > { %v654_v52 = vrot.slane %v653_v51, 1 }
  0xd7   : > { %v655_v53 = vadd.f32 %v654_v52, %v653_v51 }
  0xd9   : > { %688 = vmatmul.f32.vlgmr.msra.gmra.mxu2 %v655_v53 }
 0x14f   : > { %v643_v35 = vpop.f32.mrf.mxu1 }
 0x15c   : > { %v689_v1 = vpop.f32.mrf.mxu2 }
 0x15d   : > { %1167 = vmatmul.msk.f32.vlgmr.msra.gmra.mxu3 %vm693_vm2, %v689_v1 }
 0x1e0   : > { %v714_v8 = vpop.f32.mrf.mxu3 }
 0x1e1   : > { %v722_v9 = vmul.f32 %v720_v4, %v714_v8  ;;  %v827_v4 = vld [vmem:[%s1685_s6 + $0x8] sm:$0xff]  ;;  %v838_v8 = vpop.permute.xlu0 %837 }
 0x1e3   : > { %v731_v11 = vadd.f32 %v730_v7, %v722_v9  ;;  %v833_v7 = vpop.permute.xlu2 %832 }
 0x1e5   : > { %v736_v12 = vadd.f32 %v734_v10, %v731_v11  ;;  %v843_v11 = vpop.permute.xlu1 %842 }
 0x1e7   : > { %v737_v14 = vmax.f32 %v736_v12, 0.0 }
 0x1e9   : > { %v742_v15 = vmul.f32 %v740_v13, %v737_v14 }
 0x1eb   : > { %v743_v16 = vrot.slane %v742_v15, 4 }
 0x1ed   : > { %v744_v17 = vadd.f32 %v743_v16, %v742_v15 }
 0x1ef   : > { %v745_v18 = vrot.slane %v744_v17, 2 }
 0x1f1   : > { %v746_v19 = vadd.f32 %v745_v18, %v744_v17  ;;  %v848_v17 = vpop.permute.xlu2 %847 }
 0x1f3   : > { %v747_v22 = vrot.slane %v746_v19, 1 }
 0x1f5   : > { %v748_v23 = vadd.f32 %v747_v22, %v746_v19 }
 0x1f7   : > { %v755_v24 = vadd.f32 %v754_v21, %v748_v23 }
 0x1f9   : > { %v1168_v25 = vmul.f32 -1.442695, %v755_v24 }
 0x1fb   : > { %1244 = vpow2.f32 %v1168_v25 }
 0x201   : > { %v1245_v26 = vpop.eup %1244 }
 0x202   : > { %v759_v27 = vadd.f32 1.0, %v1245_v26  ;;  %v895_v26 = vld [vmem:[%s1686_s7] sm:$0xff] }
 0x204   : > { %1246 = vrcp.f32 %v759_v27  ;;  %v771_v31 = vand.u32 2147483648, %v759_v27  ;;  %v769_v33 = vand.u32 2147483647, %v759_v27  ;;  %vm765_vm4 = vweird.f32 %v759_v27 }
 0x206   : > { %v772_v36 = vor.u32 1.1754944e-38, %v771_v31  ;;  %vm770_vm6 = vcmp.eq.f32.partialorder %v769_v33, 8.507059e+37  ;;  %v896_v31 = vld [vmem:[%s1686_s7 + $0x8] sm:$0xff]  ;;  %v549_v33 = vld [vmem:[%s1687_s8 + $0x50] sm:$0xff] }
 0x207   : > { %1042 = vperm.xlu2 %1241, %v549_v33  }
 0x20a   : > { %v1247_v28 = vpop.eup %1246 }
 0x20b   : > { %v761_v29 = vmul.f32 %v1247_v28, %v759_v27  ;;  %vm766_vm3 = vweird.f32 %v1247_v28 }
 0x20c   : > { %vm767_vm5 = vmor %vm765_vm4, %vm766_vm3 }
 0x20d   : > { %v762_v30 = vsub.f32 1.0, %v761_v29 }
 0x20f   : > { %v763_v32 = vmul.f32 %v1247_v28, %v762_v30 }
 0x211   : > { %v764_v34 = vadd.f32 %v1247_v28, %v763_v32  ;;  %v548_v32 = vld [vmem:[%s1687_s8 + $0x48] sm:$0xff] }
 0x212   : > { %1037 = vperm.xlu1 %1240, %v548_v32  }
 0x213   : > { %v768_v37 = vsel %vm767_vm5, %v1247_v28, %v764_v34 }
 0x214   : > { %v773_v38 = vsel %vm770_vm6, %v772_v36, %v768_v37  ;;  %v982_v36 = vpop.permute.xlu1 %981  ;;  %v987_v37 = vpop.permute.xlu2 %986 }
 0x215   : > { %v775_v39 = vmul.f32 %v773_v38, %v643_v35  ;;  %v989_v38 = vmul.f32 %v1594_v5, %v987_v37 }
 0x217   : > { %v781_v41 = vadd.f32 %v779_v40, %v775_v39 }
 0x219   : > { %v782_v42 = vmul.f32 %v781_v41, %v781_v41 }
 0x21b   : > { %v783_v43 = vrot.slane %v782_v42, 4 }
 0x21d   : > { %v784_v44 = vadd.f32 %v783_v43, %v782_v42 }
 0x21f   : > { %v785_v45 = vrot.slane %v784_v44, 2 }
 0x221   : > { %v786_v46 = vadd.f32 %v785_v45, %v784_v44  ;;  %v999_v44 = vpop.permute.xlu1 %998 }
 0x223   : > { %v787_v47 = vrot.slane %v786_v46, 1 }
 0x225   : > { %v788_v48 = vadd.f32 %v787_v47, %v786_v46 }
 0x227   : > { %1248 = vrsqrt.f32 %v788_v48  ;;  %vm795_vm8 = vweird.f32 %v788_v48 }
 0x22d   : > { %v1249_v49 = vpop.eup %1248 }
 0x22e   : > { %v790_v50 = vmul.f32 %v1249_v49, %v788_v48  ;;  %vm796_vm7 = vweird.f32 %v1249_v49 }
 0x22f   : > { %vm797_vm9 = vmor %vm795_vm8, %vm796_vm7 }
 0x230   : > { %v791_v51 = vmul.f32 %v1249_v49, %v790_v50 }
 0x232   : > { %v792_v52 = vmul.f32 0.5, %v791_v51  ;;  %v1010_v51 = vpop.permute.xlu2 %1009 }
 0x234   : > { %v793_v53 = vsub.f32 1.5, %v792_v52 }
 0x236   : > { %v794_v55 = vmul.f32 %v1249_v49, %v793_v53  ;;  %v1012_v53 = vperm.slane %v1010_v51, 0 }
 0x238   : > { %v798_v57 = vsel %vm797_vm9, %v1249_v49, %v794_v55 }
 0x239   : > { %v799_v58 = vmul.f32 2.0, %v798_v57 }
 0x23b   : > { %v800_v59 = vmul.f32 %v799_v58, %v781_v41  ;;  %v993_v41 = vpop.permute.xlu0 %992 }
 0x23d   : > { %821 = vmatpush.msrb.mxu3 %v800_v59 }
 0x23e   : > { %1169 = vmatmul.msk.f32.vlgmr.msrb.gmra.mxu3 %vm693_vm2, %v801_v60 }
 0x2c1   : > { %v823_v0 = vpop.f32.mrf.mxu3 }
 0x2c2   : > { %v824_v1 = vadd.f32 %v823_v0, %v802_v62 }
 0x2c4   : > { %877 = vmatpush.msrb.mxu1 %v824_v1 }
 0x2c5   : > { %1170 = vmatmul.msk.f32.vlgmr.msrb.gmra.mxu1 %vm693_vm2, %v826_v2 }
 0x2cd   : > { %1171 = vmatmul.msk.f32.gmra.mxu1 %vm693_vm2, %v827_v4 }
 0x2d5   : > { %1172 = vmatmul.msk.f32.gmra.mxu1 %vm693_vm2, %v828_v56 }
 0x2dd   : > { %1173 = vmatmul.msk.f32.gmra.mxu1 %vm693_vm2, %v829_v63 }
 0x342   : > { %v879_v6 = vpop.f32.mrf.mxu1 }
 0x343   : > { %v880_v12 = vadd.f32 %v879_v6, %v833_v7  ;;  %v1043_v6 = vpop.permute.xlu2 %1042  ;;  %v1038_v7 = vpop.permute.xlu1 %1037 }
 0x345   : > { %v891_v15 = vmax.f32 %v880_v12, 0.0 }
 0x34a   : > { %v882_v3 = vpop.f32.mrf.mxu1 }
 0x34b   : > { %v883_v10 = vadd.f32 %v882_v3, %v838_v8 }
 0x34d   : > { %v892_v14 = vmax.f32 %v883_v10, 0.0 }
 0x34f   : > { %v927_v19 = vadd.f32 %v892_v14, %v891_v15 }
 0x352   : > { %v885_v9 = vpop.f32.mrf.mxu1 }
 0x353   : > { %v886_v13 = vadd.f32 %v885_v9, %v843_v11 }
 0x355   : > { %v893_v16 = vmax.f32 %v886_v13, 0.0 }
 0x357   : > { %v928_v21 = vadd.f32 %v927_v19, %v893_v16 }
 0x35a   : > { %v888_v18 = vpop.f32.mrf.mxu1 }
 0x35b   : > { %v889_v20 = vadd.f32 %v888_v18, %v848_v17 }
 0x35d   : > { %v894_v22 = vmax.f32 %v889_v20, 0.0 }
 0x35f   : > { %v929_v23 = vadd.f32 %v928_v21, %v894_v22  ;;  %915 = vmatpush.msra.mxu3 %v894_v22 }
 0x361   : > { %v930_v24 = vrot.slane %v929_v23, 4  ;;  %916 = vmatpush.msra.mxu3 %v893_v16 }
 0x363   : > { %v931_v25 = vadd.f32 %v930_v24, %v929_v23  ;;  %917 = vmatpush.msra.mxu3 %v892_v14 }
 0x365   : > { %v932_v27 = vrot.slane %v931_v25, 2  ;;  %918 = vmatpush.msra.mxu3 %v891_v15 }
 0x366   : > { %1174 = vmatmul.msk.f32.vlgmr.msra.gmra.mxu3 %vm622_vm1, %v895_v26 }
 0x367   : > { %v933_v28 = vadd.f32 %v932_v27, %v931_v25  ;;  %974 = vmatpush.msrb.mxu3 %v1549_v54 }
 0x369   : > { %v934_v29 = vrot.slane %v933_v28, 1 }
 0x36b   : > { %v935_v30 = vadd.f32 %v934_v29, %v933_v28 }
 0x36d   : > { %952 = vmatmul.f32.vlgmr.msrb.gmra.mxu0 %v935_v30 }
 0x36e   : > { %1175 = vmatmul.msk.f32.gmra.mxu3 %vm622_vm1, %v896_v31 }
 0x3e9   : > { %v920_v34 = vpop.f32.mrf.mxu3 }
 0x3ea   : > { %v953_v54 = vpop.f32.mrf.mxu0 }
 0x3eb   : > { %1176 = vmatmul.msk.f32.vlgmr.msrb.gmra.mxu3 %vm693_vm2, %v953_v54 }
 0x3f1   : > { %v923_v35 = vpop.f32.mrf.mxu3 }
 0x46e   : > { %v976_v39 = vpop.f32.mrf.mxu3 }
 0x46f   : > { %v984_v40 = vmul.f32 %v982_v36, %v976_v39 }
 0x471   : > { %v990_v42 = vadd.f32 %v989_v38, %v984_v40 }
 0x473   : > { %v995_v43 = vadd.f32 %v993_v41, %v990_v42 }
 0x475   : > { %v996_v45 = vmax.f32 %v995_v43, 0.0 }
 0x477   : > { %v1001_v46 = vmul.f32 %v999_v44, %v996_v45 }
 0x479   : > { %v1002_v47 = vrot.slane %v1001_v46, 4 }
 0x47b   : > { %v1003_v48 = vadd.f32 %v1002_v47, %v1001_v46 }
 0x47d   : > { %v1004_v49 = vrot.slane %v1003_v48, 2 }
 0x47f   : > { %v1005_v50 = vadd.f32 %v1004_v49, %v1003_v48 }
 0x481   : > { %v1006_v52 = vrot.slane %v1005_v50, 1 }
 0x483   : > { %v1007_v55 = vadd.f32 %v1006_v52, %v1005_v50 }
 0x485   : > { %v1013_v57 = vadd.f32 %v1012_v53, %v1007_v55 }
 0x487   : > { %v1177_v58 = vmul.f32 -1.442695, %v1013_v57 }
 0x489   : > { %1250 = vpow2.f32 %v1177_v58 }
 0x48f   : > { %v1251_v5 = vpop.eup %1250 }
 0x490   : > { %v1017_v59 = vadd.f32 1.0, %v1251_v5 }
 0x492   : > { %1252 = vrcp.f32 %v1017_v59  ;;  %v1029_v0 = vand.u32 2147483648, %v1017_v59  ;;  %v1027_v2 = vand.u32 2147483647, %v1017_v59  ;;  %vm1023_vm11 = vweird.f32 %v1017_v59 }
 0x494   : > { %v1030_v56 = vor.u32 1.1754944e-38, %v1029_v0  ;;  %vm1028_vm13 = vcmp.eq.f32.partialorder %v1027_v2, 8.507059e+37 }
 0x498   : > { %v1253_v60 = vpop.eup %1252 }
 0x499   : > { %v1019_v61 = vmul.f32 %v1253_v60, %v1017_v59  ;;  %vm1024_vm10 = vweird.f32 %v1253_v60 }
 0x49a   : > { %vm1025_vm12 = vmor %vm1023_vm11, %vm1024_vm10 }
 0x49b   : > { %v1020_v62 = vsub.f32 1.0, %v1019_v61 }
 0x49d   : > { %v1021_v1 = vmul.f32 %v1253_v60, %v1020_v62 }
 0x49f   : > { %v1022_v4 = vadd.f32 %v1253_v60, %v1021_v1 }
 0x4a1   : > { %v1026_v63 = vsel %vm1025_vm12, %v1253_v60, %v1022_v4 }
 0x4a2   : > { %v1031_v3 = vsel %vm1028_vm13, %v1030_v56, %v1026_v63 }
 0x4a3   : > { %v1034_v8 = vmul.f32 %v1031_v3, %v923_v35  ;;  %v1033_v9 = vmul.f32 %v1031_v3, %v920_v34 }
 0x4a5   : > { %v1046_v10 = vadd.f32 %v1043_v6, %v1034_v8  ;;  %v1045_v11 = vadd.f32 %v1038_v7, %v1033_v9 }
 0x4a7   : > { %1048 = vst [vmem:[%s528_s22 + $0x8] sm:$0xff] %v1046_v10 }
 0x4a8   : > { %1047 = vst [vmem:[%s528_s22] sm:$0xff] %v1045_v11 }
 0x4a9   : > { %1281 = shalt.err (!%p1278_p7)
}
 0x4aa   : > { %s1322_s22 = smov 128   ;;  %s1323_s27 = smov 256  }
 0x4ab   : > { %s1324_s1 = smov 8  }
 0x4ac   : > { %1182 = dma.vmem_to_hbm [thread:$0]  (%p1439_p6), %s1062_s20, 256, %s1064_s17, %s1050_s21, %s1322_s22, %s1323_s27, %s1324_s1  }
 0x4ad PF: > { %s1078_s25 = sand.u32 1, %s1304_s29   ;;  %p1185_p10 = pnand %p1155_p9, %p1443_p8 }
 0x4ae   : > { %s1079_s26 = scalar_lea.sflag [#allocation4], %s1078_s25 }
 0x4af   : > { %p1186_p11 = pneg %p1185_p10 }
 0x4b1   : > { %1299 = dma.done.wait (%p1186_p11), %s1079_s26, 256  }
 0x4b2   : > { %1301 = vsyncadd (%p1186_p11), %s1079_s26, 4294967040  ;;  %s1708_s16 = sld [smem:[#allocation7_spill]]  ;;  %s1711_s29 = smov %s1308_s30 }
 0x4b3   : > { %s1709_s18 = sld [smem:[#allocation6_spill]] }
 0x4b4   : > { %s1710_s15 = sld [smem:[#allocation8_spill]] }
 0x4b8   : > { %p24_p12 = scmp.ge.s32.totalorder %s1708_s16, 4  }
 0x4b9   : > { %s1712_s30 = smov %s1709_s18 }
 0x4ba   :  { %26 = sbr.rel (!%p24_p12) target bundleno = 6 (0x6), region = 160 }
 0x4bf   :  { %1085 = vsyncpa [#allocation4], 1 }
 0x4c0   :  { %1087 = vsyncpa [#allocation4 + $0x1], 1 }

</bundles_post_ra>
